<compile_context>
chip_gen: v7x
topology: tpu7x:2x2x1
jax: 0.10.0
libtpu: 0.0.40
codegen_flags: <defaults>
</compile_context>

<pallas_src>
import jax
import jax.numpy as jnp
from jax.experimental import pallas as pl
from jax.experimental.pallas import tpu as pltpu

_EPS = 1e-12  # matches torch.nn.functional.normalize default eps


def _make_tsm_kernel(Ns, TS, num_s_tiles, matmul_dtype, cast_query):
    needs_mask = (Ns % TS) != 0
    last_valid = Ns - (num_s_tiles - 1) * TS  # valid columns in the final tile

    def kernel(q_ref, s_ref, o_ref, maxsim_ref, *maybe_qcast):
        # q_ref: (1, TQ, D)  s_ref: (1, TS, D)  o_ref: (1, TQ, 1)
        # maxsim_ref: (TQ, 1) f32 running max of inv_snorm-scaled similarity
        # maybe_qcast: optional (TQ, D) matmul-dtype cached query cast
        s_idx = pl.program_id(2)
        qcast_ref = maybe_qcast[0] if cast_query else None

        @pl.when(s_idx == 0)
        def _init():
            maxsim_ref[...] = jnp.full(maxsim_ref.shape, -jnp.inf,
                                       maxsim_ref.dtype)
            if cast_query:
                qcast_ref[...] = q_ref[0].astype(matmul_dtype)

        s = s_ref[0]                                         # (TS, D) raw dtype
        s32 = s.astype(jnp.float32)                          # single upcast
        s_ssq = jnp.sum(s32 * s32, axis=-1)                  # (TS,)
        inv_snorm = jax.lax.rsqrt(jnp.maximum(s_ssq, _EPS * _EPS))

        lhs = qcast_ref[...] if cast_query else q_ref[0]
        rhs = s if s.dtype == matmul_dtype else s.astype(matmul_dtype)

        # (TQ, D) . (TS, D)^T -> (TQ, TS) on the MXU, f32 accumulation.
        sim = jax.lax.dot_general(
            lhs, rhs,
            dimension_numbers=(((1,), (1,)), ((), ())),
            preferred_element_type=jnp.float32)
        # Fold the support-side normalization in as a column scale.
        sim = sim * inv_snorm[None, :]

        def _update(v):
            maxsim_ref[...] = jnp.maximum(
                maxsim_ref[...], jnp.max(v, axis=-1, keepdims=True))

        if needs_mask:
            is_last = s_idx == num_s_tiles - 1

            @pl.when(is_last)
            def _update_masked():
                # Only the last support tile is padded; mask only there.
                col = jax.lax.broadcasted_iota(jnp.int32, sim.shape, 1)
                _update(jnp.where(col < last_valid, sim, -jnp.inf))

            @pl.when(jnp.logical_not(is_last))
            def _update_plain():
                _update(sim)
        else:
            _update(sim)

        @pl.when(s_idx == num_s_tiles - 1)
        def _finalize():
            # Query norm folded in after the max (inv_qnorm > 0 per row).
            q32 = q_ref[0].astype(jnp.float32)               # (TQ, D)
            q_ssq = jnp.sum(q32 * q32, axis=-1, keepdims=True)
            inv_qnorm = jax.lax.rsqrt(jnp.maximum(q_ssq, _EPS * _EPS))
            dist = 1.0 - inv_qnorm * maxsim_ref[...]         # (TQ, 1)
            o_ref[...] = dist[None].astype(o_ref.dtype)

    return kernel


def _clamp_tile(t, n):
    """Full dim if it fits, else a multiple-of-8 tile (BlockSpec constraint)."""
    if t >= n:
        return n
    return max(8, (t // 8) * 8)


def tsm_cosine(query, support, *, query_tile=128, support_tile=256,
               matmul_dtype=None, support_buffers=None):
    """Pallas TSM forward (cosine distance).

    query: (B, Nq, D), support: (B, Ns, D) -> (B,) mean over query tokens of
    the minimum cosine distance to any support token.

    matmul_dtype: dtype fed to the MXU (defaults to the input dtype, so bf16
      inputs get the bf16 MXU path with no extra casts; forcing bf16 with f32
      inputs caches a bf16 query copy once per (batch, q-tile)).
    support_buffers: optional pipeline depth for the support stream
      (pl.Buffered) if the support DMA is exposed at small tiles.
    """
    B, Nq, D = query.shape
    Bs, Ns, Ds = support.shape
    assert B == Bs and D == Ds, "batch / feature dims must match"

    if matmul_dtype is None:
        matmul_dtype = query.dtype
    matmul_dtype = jnp.dtype(matmul_dtype)
    cast_query = jnp.dtype(query.dtype) != matmul_dtype

    TQ = _clamp_tile(query_tile, Nq)
    TS = _clamp_tile(support_tile, Ns)
    num_q_tiles = pl.cdiv(Nq, TQ)
    num_s_tiles = pl.cdiv(Ns, TS)

    kernel = _make_tsm_kernel(Ns, TS, num_s_tiles, matmul_dtype, cast_query)

    s_map = lambda b, qi, si: (b, si, 0)
    if support_buffers is not None and num_s_tiles >= 2:
        s_spec = pl.BlockSpec((1, TS, D), s_map,
                              pipeline_mode=pl.Buffered(support_buffers))
    else:
        s_spec = pl.BlockSpec((1, TS, D), s_map)

    scratch = [pltpu.VMEM((TQ, 1), jnp.float32)]     # running max similarity
    if cast_query:
        scratch.append(pltpu.VMEM((TQ, D), matmul_dtype))

    # Explicit VMEM limit with headroom, capped at v7x's 64 MiB physical VMEM.
    q_bytes = TQ * D * jnp.dtype(query.dtype).itemsize
    s_bytes = TS * D * jnp.dtype(support.dtype).itemsize
    o_bytes = TQ * 4
    scratch_bytes = TQ * 4 + (TQ * D * matmul_dtype.itemsize if cast_query else 0)
    est = 2 * (q_bytes + s_bytes + o_bytes) + scratch_bytes
    vmem_limit = int(min(max(4 * est + (2 << 20), 32 << 20), 64 << 20))

    out = pl.pallas_call(
        kernel,
        out_shape=jax.ShapeDtypeStruct((B, Nq, 1), jnp.float32),
        grid_spec=pltpu.PrefetchScalarGridSpec(
            num_scalar_prefetch=0,
            grid=(B, num_q_tiles, num_s_tiles),
            in_specs=[
                pl.BlockSpec((1, TQ, D), lambda b, qi, si: (b, qi, 0)),
                s_spec,
            ],
            out_specs=pl.BlockSpec((1, TQ, 1), lambda b, qi, si: (b, qi, 0)),
            scratch_shapes=scratch,
        ),
        compiler_params=pltpu.CompilerParams(
            dimension_semantics=("parallel", "parallel", "arbitrary"),
            vmem_limit_bytes=vmem_limit),
    )(query, support)

    # Tiny final reduction (mean over query tokens) in plain JAX.
    return jnp.mean(out[:, :, 0], axis=1)


def tsm_cosine_ref(query, support):
    """Pure-JAX reference (mirrors the PyTorch module)."""
    q = query.astype(jnp.float32)
    s = support.astype(jnp.float32)
    qn = q / jnp.maximum(jnp.linalg.norm(q, axis=2, keepdims=True), _EPS)
    sn = s / jnp.maximum(jnp.linalg.norm(s, axis=2, keepdims=True), _EPS)
    dist = 1.0 - jnp.einsum("bqd,bsd->bqs", qn, sn)
    return jnp.min(dist, axis=2).mean(axis=1)


if __name__ == "__main__":
    # TSM has no learnable parameters — only the distance computation.
    key = jax.random.PRNGKey(0)
    keys = jax.random.split(key, 10)

    # Case 1: small shapes, single support / query tile, f32 MXU path.
    B, Nq, Ns, D = 2, 8, 16, 32
    query = jax.random.normal(keys[0], (B, Nq, D), dtype=jnp.float32)
    support = jax.random.normal(keys[1], (B, Ns, D), dtype=jnp.float32)
    out = tsm_cosine(query, support)
    jax.block_until_ready(out)
    ref = tsm_cosine_ref(query, support)
    assert out.shape == (B,)
    assert jnp.allclose(out, ref, atol=1e-5, rtol=1e-5), (out, ref)

    # Case 2: multi-tile support with a partial last tile -> exercises the
    # running-max accumulator and the last-tile-only mask path.
    query2 = jax.random.normal(keys[2], (2, 8, 32), dtype=jnp.float32)
    support2 = jax.random.normal(keys[3], (2, 40, 32), dtype=jnp.float32)
    out2 = tsm_cosine(query2, support2, support_tile=16)
    jax.block_until_ready(out2)
    ref2 = tsm_cosine_ref(query2, support2)
    assert jnp.allclose(out2, ref2, atol=1e-5, rtol=1e-5), (out2, ref2)

    # Case 3: B == 1 with a tiled (parallel) query axis and multi-tile support.
    query3 = jax.random.normal(keys[4], (1, 24, 32), dtype=jnp.float32)
    support3 = jax.random.normal(keys[5], (1, 40, 32), dtype=jnp.float32)
    out3 = tsm_cosine(query3, support3, query_tile=8, support_tile=16)
    jax.block_until_ready(out3)
    ref3 = tsm_cosine_ref(query3, support3)
    assert jnp.allclose(out3, ref3, atol=1e-5, rtol=1e-5), (out3, ref3)

    # Case 4: bf16 inputs -> bf16 MXU automatically (no casts on the hot path).
    query4 = jax.random.normal(keys[6], (2, 8, 32), dtype=jnp.bfloat16)
    support4 = jax.random.normal(keys[7], (2, 24, 32), dtype=jnp.bfloat16)
    out4 = tsm_cosine(query4, support4, support_tile=16)
    jax.block_until_ready(out4)
    ref4 = tsm_cosine_ref(query4, support4)
    assert jnp.allclose(out4.astype(jnp.float32), ref4, atol=3e-2), (out4, ref4)

    # Case 5: f32 inputs with a forced-bf16 MXU -> cached bf16 query scratch.
    query5 = jax.random.normal(keys[8], (2, 16, 32), dtype=jnp.float32)
    support5 = jax.random.normal(keys[9], (2, 24, 32), dtype=jnp.float32)
    out5 = tsm_cosine(query5, support5, support_tile=16,
                      matmul_dtype=jnp.bfloat16)
    jax.block_until_ready(out5)
    ref5 = tsm_cosine_ref(query5, support5)
    assert jnp.allclose(out5, ref5, atol=3e-2), (out5, ref5)

    print("KERNEL_OK")
</pallas_src>

<mosaic_0001>
module attributes {stable_mosaic.version = 11 : i64} {
  func.func @kernel(%arg0: i32, %arg1: i32, %arg2: i32, %arg3: memref<1x8x32xf32, #tpu.memory_space<vmem>>, %arg4: memref<1x16x32xf32, #tpu.memory_space<vmem>>, %arg5: memref<1x8x1xf32, #tpu.memory_space<vmem>>, %arg6: memref<8x1xf32, #tpu.memory_space<vmem>>) attributes {dimension_semantics = [#tpu.dimension_semantics<parallel>, #tpu.dimension_semantics<parallel>, #tpu.dimension_semantics<arbitrary>], iteration_bounds = array<i64: 2, 1, 1>, scalar_prefetch = 0 : i64, scratch_operands = 1 : i64, tpu.core_type = #tpu.core_type<tc>, window_params = [{transform_indices = @transform_0, window_bounds = array<i64: 1, 8, 32>}, {transform_indices = @transform_1, window_bounds = array<i64: 1, 16, 32>}, {transform_indices = @transform_2, window_bounds = array<i64: 1, 8, 1>}]} {
    %c0_i32 = arith.constant 0 : i32
    %0 = arith.cmpi eq, %arg2, %c0_i32 : i32
    %1 = arith.extui %0 : i1 to i32
    %c0_i32_0 = arith.constant 0 : i32
    %2 = arith.cmpi ne, %1, %c0_i32_0 : i32
    scf.if %2 {
      %cst_15 = arith.constant 0xFF800000 : f32
      %24 = vector.broadcast %cst_15 : f32 to vector<8x1xf32>
      %c0_16 = arith.constant 0 : index
      %c0_17 = arith.constant 0 : index
      %25 = vector.load %arg6[%c0_16, %c0_17] : memref<8x1xf32, #tpu.memory_space<vmem>>, vector<8x1xf32>
      tpu.vector_store %arg6[%c0_16, %c0_17], %24 {strides = array<i32>} : memref<8x1xf32, #tpu.memory_space<vmem>>, vector<8x1xf32>,
    } else {
    }
    %c0 = arith.constant 0 : index
    %c0_1 = arith.constant 0 : index
    %c0_2 = arith.constant 0 : index
    %3 = vector.load %arg4[%c0, %c0_1, %c0_2] : memref<1x16x32xf32, #tpu.memory_space<vmem>>, vector<1x16x32xf32>
    %4 = vector.shape_cast %3 : vector<1x16x32xf32> to vector<16x32xf32>
    %5 = arith.mulf %4, %4 : vector<16x32xf32>
    %cst = arith.constant dense<0.000000e+00> : vector<16xf32>
    %6 = vector.multi_reduction <add>, %5, %cst [1] : vector<16x32xf32> to vector<16xf32>
    %cst_3 = arith.constant 1.000000e-24 : f32
    %7 = vector.broadcast %cst_3 : f32 to vector<16xf32>
    %8 = arith.maximumf %6, %7 : vector<16xf32>
    %9 = math.rsqrt %8 : vector<16xf32>
    %c0_4 = arith.constant 0 : index
    %c0_5 = arith.constant 0 : index
    %c0_6 = arith.constant 0 : index
    %10 = vector.load %arg3[%c0_4, %c0_5, %c0_6] : memref<1x8x32xf32, #tpu.memory_space<vmem>>, vector<1x8x32xf32>
    %11 = vector.shape_cast %10 : vector<1x8x32xf32> to vector<8x32xf32>
    %cst_7 = arith.constant dense<0.000000e+00> : vector<8x16xf32>
    %12 = tpu.matmul %11, %4, %cst_7 {dimension_numbers = #tpu.dot_dimension_numbers<[1], [1], [0], [0], [0, 0, 1, 0], [], []>} : vector<8x32xf32>, vector<16x32xf32>, vector<8x16xf32> -> vector<8x16xf32>
    %13 = vector.shape_cast %9 : vector<16xf32> to vector<1x16xf32>
    %14 = vector.broadcast %13 : vector<1x16xf32> to vector<8x16xf32>
    %15 = arith.mulf %12, %14 : vector<8x16xf32>
    %c0_8 = arith.constant 0 : index
    %c0_9 = arith.constant 0 : index
    %16 = vector.load %arg6[%c0_8, %c0_9] : memref<8x1xf32, #tpu.memory_space<vmem>>, vector<8x1xf32>
    %cst_10 = arith.constant dense<0xFF800000> : vector<8xf32>
    %17 = vector.multi_reduction <maximumf>, %15, %cst_10 [1] : vector<8x16xf32> to vector<8xf32>
    %18 = vector.shape_cast %17 : vector<8xf32> to vector<8x1xf32>
    %19 = arith.maximumf %16, %18 : vector<8x1xf32>
    %c0_11 = arith.constant 0 : index
    %c0_12 = arith.constant 0 : index
    %20 = vector.load %arg6[%c0_11, %c0_12] : memref<8x1xf32, #tpu.memory_space<vmem>>, vector<8x1xf32>
    tpu.vector_store %arg6[%c0_11, %c0_12], %19 {strides = array<i32>} : memref<8x1xf32, #tpu.memory_space<vmem>>, vector<8x1xf32>,
    %c0_i32_13 = arith.constant 0 : i32
    %21 = arith.cmpi eq, %arg2, %c0_i32_13 : i32
    %22 = arith.extui %21 : i1 to i32
    %c0_i32_14 = arith.constant 0 : i32
    %23 = arith.cmpi ne, %22, %c0_i32_14 : i32
    scf.if %23 {
      %c0_15 = arith.constant 0 : index
      %c0_16 = arith.constant 0 : index
      %c0_17 = arith.constant 0 : index
      %24 = vector.load %arg3[%c0_15, %c0_16, %c0_17] : memref<1x8x32xf32, #tpu.memory_space<vmem>>, vector<1x8x32xf32>
      %25 = vector.shape_cast %24 : vector<1x8x32xf32> to vector<8x32xf32>
      %26 = arith.mulf %25, %25 : vector<8x32xf32>
      %cst_18 = arith.constant dense<0.000000e+00> : vector<8xf32>
      %27 = vector.multi_reduction <add>, %26, %cst_18 [1] : vector<8x32xf32> to vector<8xf32>
      %28 = vector.shape_cast %27 : vector<8xf32> to vector<8x1xf32>
      %cst_19 = arith.constant 1.000000e-24 : f32
      %29 = vector.broadcast %cst_19 : f32 to vector<8x1xf32>
      %30 = arith.maximumf %28, %29 : vector<8x1xf32>
      %31 = math.rsqrt %30 : vector<8x1xf32>
      %c0_20 = arith.constant 0 : index
      %c0_21 = arith.constant 0 : index
      %32 = vector.load %arg6[%c0_20, %c0_21] : memref<8x1xf32, #tpu.memory_space<vmem>>, vector<8x1xf32>
      %33 = arith.mulf %31, %32 : vector<8x1xf32>
      %cst_22 = arith.constant 1.000000e+00 : f32
      %34 = vector.broadcast %cst_22 : f32 to vector<8x1xf32>
      %35 = arith.subf %34, %33 : vector<8x1xf32>
      %36 = vector.shape_cast %35 : vector<8x1xf32> to vector<1x8x1xf32>
      %c0_23 = arith.constant 0 : index
      %c0_24 = arith.constant 0 : index
      %c0_25 = arith.constant 0 : index
      %37 = vector.load %arg5[%c0_23, %c0_24, %c0_25] : memref<1x8x1xf32, #tpu.memory_space<vmem>>, vector<1x8x1xf32>
      tpu.vector_store %arg5[%c0_23, %c0_24, %c0_25], %36 {strides = array<i32>} : memref<1x8x1xf32, #tpu.memory_space<vmem>>, vector<1x8x1xf32>,
    } else {
    }
    return
  }
  func.func @transform_0(%arg0: i32, %arg1: i32, %arg2: i32) -> (i32, i32, i32) {
    %c0_i32 = arith.constant 0 : i32
    %c0_i32_0 = arith.constant 0 : i32
    return %arg0, %arg1, %c0_i32 : i32, i32, i32
  }
  func.func @transform_1(%arg0: i32, %arg1: i32, %arg2: i32) -> (i32, i32, i32) {
    %c0_i32 = arith.constant 0 : i32
    %c0_i32_0 = arith.constant 0 : i32
    return %arg0, %arg2, %c0_i32 : i32, i32, i32
  }
  func.func @transform_2(%arg0: i32, %arg1: i32, %arg2: i32) -> (i32, i32, i32) {
    %c0_i32 = arith.constant 0 : i32
    %c0_i32_0 = arith.constant 0 : i32
    return %arg0, %arg1, %c0_i32 : i32, i32, i32
  }
}

</mosaic_0001>

<bundles_post_ra>
// kernel: tpu_custom_call.1
= control target key start
LH: loop header
LB: loop body
LE: loop exit
PB: predicated region body
PF: predicated region fallthrough
CT: control target
= control target key end

     0   :  { %7 = vsyncpa [#allocation4], 0  ;;  %s920_s0 = inlined_call_operand.hbm [shape: f32[2,8,32], index: 0, kind: input, shape index: {}]   ;;  %s921_s1 = inlined_call_operand.hbm [shape: f32[2,16,32], index: 1, kind: input, shape index: {}]   ;;  %s922_s2 = inlined_call_operand.vmem [shape: f32[2,8,1], index: 2, kind: output, shape index: {}]  }
   0x1   :  { %9 = vsyncpa [#allocation4 + $0x1], 0 }
   0x2   :  { %10 = vsyncpa [#allocation6], 0 }
   0x3   :  { %12 = vsyncpa [#allocation6 + $0x1], 0  ;;  %s743_s9 = smov 0   ;;  %s745_s10 = smov 0  }
   0x4   :  { %s747_s11 = smov 0   ;;  %s749_s12 = smov 0  }
   0x5   :  { %s751_s13 = smov 0   ;;  %s753_s14 = smov 0  }
   0x6 LB: > { %s499_s15 = sadd.s32 4294967295, %s718_s14   ;;  %s37_s16 = sadd.s32 1, %s714_s13  ;;  %s718_s14 = sphi %s753_s14, %s18_s14   ;;  %s714_s13 = sphi %s751_s13, %s935_s13   ;;  %s710_s12 = sphi %s749_s12, %s934_s12   ;;  %s706_s11 = sphi %s747_s11, %s933_s11   ;;  %s702_s10 = sphi %s745_s10, %s932_s10   ;;  %s698_s9 = sphi %s743_s9, %s931_s9  }
   0x7   : > { %p39_p0 = scmp.ge.s32.totalorder %s37_s16, 2  ;;  %s46_s17 = sadd.s32 1, %s706_s11 }
   0x8   : > { %p53_p1 = scmp.ne.s32.totalorder %s706_s11, %s702_s10  ;;  %p54_p2 = scmp.eq.s32.totalorder %s718_s14, 0 }
   0x9   : > { %s937_s16 = smov (%p39_p0, %s37_s16), 0  ;;  %p59_p4 = scmp.ne.s32.totalorder %s702_s10, %s698_s9 }
   0xa   : > { %p779_p3 = por %p54_p2, %p53_p1  ;;  %s41_s19 = ssub.s32 %s714_s13, %s937_s16 }
   0xb   : > { %p60_p5 = scmp.eq.s32.totalorder %s499_s15, 0  ;;  %p44_p6 = scmp.eq.s32.totalorder %s41_s19, 0 }
   0xc   : > { %p543_p8 = scmp.lt.s32.totalorder %s718_s14, 2  ;;  %s795_s22 = sand.u32 1, %s706_s11  }
   0xd   : > { %p786_p7 = por %p60_p5, %p59_p4  ;;  %s504_s23 = sshll.u32 %s714_s13, 7 }
   0xe   : > { %s792_s21 = scalar_select %p44_p6, %s706_s11, %s46_s17  }
   0xf   : > { %s925_s20 = scalar_select %p786_p7, 1, 0 }
  0x10   : > { %s503_s24 = sshll.u32 %s795_s22, 3  ;;  %s802_s27 = scalar_lea.hbm %s920_s0, %s504_s23 }
  0x11   : > { %s143_s28 = scalar_lea.vmem [#allocation3], %s503_s24  ;;  %p806_p9 = pnand %p543_p8, %p779_p3 }
  0x12   : > { %s151_s29 = sshll.u32 %s143_s28, 4  ;;  %s140_s3 = scalar_lea.sflag [#allocation4], %s795_s22  ;;  %s810_s29 = int_to_ptr.vmem [resolvable:$true] %s151_s29 }
  0x13   : > { %s604_s4 = scalar_lea.hbm %s802_s27, 128  ;;  %p606_p13 = pneg %p806_p9 }
  0x14   : > { %p605_p12 = scmp.ne.s32.totalorder %s802_s27, %s604_s4  ;;  %s609_s7 = scalar_lea.hbm %s920_s0, 256 }
  0x15   : > { %p610_p2 = scmp.lt.u32.totalorder %s802_s27, %s920_s0  ;;  %p611_p3 = scmp.lt.u32.totalorder %s609_s7, %s604_s4 }
  0x16   : > { %p607_p0 = pnand %p606_p13, %p605_p12  ;;  %p613_p5 = scmp.lt.u32.totalorder %s604_s4, %s802_s27 }
  0x17   : > { %p612_p4 = por %p611_p3, %p610_p2 }
  0x18   : > { %p608_p1 = pneg %p607_p0 }
  0x19   : > { %p614_p6 = por %p613_p5, %p612_p4 }
  0x1b   : > { %p615_p8 = pnand %p614_p6, %p608_p1 }
  0x1d   : > { %618 = shalt.err (!%p615_p8)
}
  0x1e   : > { %s619_s15 = scalar_lea.vmem %s810_s29, 128  ;;  %s720_s17 = smov [#allocation3]  }
  0x1f   : > { %p620_p12 = scmp.ne.s32.totalorder %s810_s29, %s619_s15  ;;  %s624_s18 = sshll.u32 %s720_s17, 4  ;;  %s625_s18 = int_to_ptr.vmem [resolvable:$false] %s624_s18 }
  0x20   : > { %s626_s19 = scalar_lea.vmem %s625_s18, 256  ;;  %p627_p11 = scmp.lt.s32.totalorder %s810_s29, %s625_s18 }
  0x21   : > { %p622_p0 = pnand %p620_p12, %p606_p13  ;;  %p628_p2 = scmp.lt.s32.totalorder %s626_s19, %s619_s15 }
  0x23   : > { %p623_p10 = pneg %p622_p0  ;;  %p629_p3 = por %p628_p2, %p627_p11 }
  0x25   : > { %p630_p4 = pnand %p629_p3, %p623_p10 }
  0x27   : > { %633 = shalt.err (!%p630_p4)
}
  0x28   : > { %539 = dma.hbm_to_vmem [thread:$0]  (!%p806_p9), %s802_s27, 128, %s810_s29, %s140_s3  }
  0x29   : > { %p927_p1 = scmp.lt.s32.totalorder %s718_s14, 3  ;;  %p928_p5 = scmp.ge.s32.totalorder %s718_s14, 1 }
  0x2a   : > { %s505_s24 = sshll.u32 %s795_s22, 4  ;;  %s517_s25 = sshll.u32 %s714_s13, 8 }
  0x2b   : > { %p844_p6 = pnand %p928_p5, %p927_p1  ;;  %s853_s4 = scalar_lea.hbm %s921_s1, %s517_s25 }
  0x2c   : > { %s162_s5 = scalar_lea.vmem [#allocation5], %s505_s24  ;;  %s159_s27 = scalar_lea.sflag [#allocation6], %s795_s22 }
  0x2d   : > { %s171_s6 = sshll.u32 %s162_s5, 4  ;;  %s634_s29 = scalar_lea.hbm %s853_s4, 256  ;;  %s855_s6 = int_to_ptr.vmem [resolvable:$true] %s171_s6 }
  0x2e   : > { %p635_p10 = scmp.ne.s32.totalorder %s853_s4, %s634_s29  ;;  %s639_s8 = scalar_lea.hbm %s921_s1, 512 }
  0x2f   : > { %p640_p12 = scmp.lt.u32.totalorder %s853_s4, %s921_s1  ;;  %p641_p0 = scmp.lt.u32.totalorder %s639_s8, %s634_s29 }
  0x30   : > { %p637_p11 = pnand %p635_p10, %p606_p13  ;;  %p643_p3 = scmp.lt.u32.totalorder %s634_s29, %s853_s4 }
  0x31   : > { %p642_p2 = por %p641_p0, %p640_p12 }
  0x32   : > { %p638_p8 = pneg %p637_p11 }
  0x33   : > { %p644_p4 = por %p643_p3, %p642_p2 }
  0x35   : > { %p645_p1 = pnand %p644_p4, %p638_p8 }
  0x37   : > { %648 = shalt.err (!%p645_p1)
}
  0x38   : > { %s649_s17 = scalar_lea.vmem %s855_s6, 256  ;;  %s721_s18 = smov [#allocation5]  }
  0x39   : > { %p650_p5 = scmp.ne.s32.totalorder %s855_s6, %s649_s17  ;;  %s654_s19 = sshll.u32 %s721_s18, 4  ;;  %s655_s19 = int_to_ptr.vmem [resolvable:$false] %s654_s19 }
  0x3a   : > { %s656_s24 = scalar_lea.vmem %s655_s19, 512  ;;  %p657_p7 = scmp.lt.s32.totalorder %s855_s6, %s655_s19 }
  0x3b   : > { %p652_p10 = pnand %p650_p5, %p606_p13  ;;  %p658_p12 = scmp.lt.s32.totalorder %s656_s24, %s649_s17 }
  0x3d   : > { %p653_p11 = pneg %p652_p10  ;;  %p659_p0 = por %p658_p12, %p657_p7 }
  0x3f   : > { %p660_p2 = pnand %p659_p0, %p653_p11 }
  0x41   : > { %663 = shalt.err (!%p660_p2)
}
  0x42   : > { %s722_s25 = smov 128   ;;  %s723_s26 = smov 8  }
  0x43   : > { %542 = dma.hbm_to_vmem [thread:$0]  (!%p806_p9), %s853_s4, 256, %s855_s6, %s159_s27, %s722_s25, %s722_s25, %s723_s26  }
  0x44   : > { %183 = sbr.rel (%p844_p6) target bundleno = 462 (0x1ce), region = 28  ;;  %s185_s28 = sand.u32 (!%p844_p6), 1, %s702_s10  }
  0x45   : > { %s509_s5 = sshll.u32 (!%p844_p6), %s185_s28, 3  ;;  %s186_s29 = scalar_lea.sflag (!%p844_p6), [#allocation4], %s185_s28 }
  0x46   : > { %s189_s3 = scalar_lea.vmem (!%p844_p6), [#allocation3], %s509_s5  ;;  %p930_p7 = scmp.ne.s32.totalorder (!%p844_p6), %s925_s20, 0 }
  0x4b   : > { %689 = dma.done.wait (%p930_p7), %s186_s29, 128  }
  0x4c   : > { %691 = vsyncadd (%p930_p7), %s186_s29, 4294967168  ;;  %s510_s7 = sshll.u32 %s185_s28, 4  ;;  %s195_s8 = scalar_lea.sflag [#allocation6], %s185_s28 }
  0x4d   : > { %s198_s30 = scalar_lea.vmem [#allocation5], %s510_s7 }
  0x4e   : > { %693 = dma.done.wait (%p930_p7), %s195_s8, 256  }
  0x4f   : > { %695 = vsyncadd (%p930_p7), %s195_s8, 4294967040  ;;  %v724_v0 = vmov 0.0|0.0   ;;  %vm725_vm0 = vmmov 0   ;;  %v726_v1 = vmov 0.0   ;;  %vm244_vm1 = vcmask 261120   ;;  %v240_v2 = vld [vmem:[%s198_s30] sm:$0xff] }
  0x50   : > { %528 = vmatprep.subr.bf16.mxu0 %v724_v0  ;;  %525 = vmatprep.mubr.msk.f32.mxu0 %vm725_vm0, %v726_v1  ;;  %v241_v3 = vld [vmem:[%s198_s30 + $0x8] sm:$0xff]  ;;  %vm530_vm2 = vmpackc.low %vm244_vm1, %vm244_vm1  ;;  %v242_v5 = vmul.f32 %v240_v2, %v240_v2  ;;  %vm238_vm3 = vcmask 7168   ;;  %v727_v12 = vmov -inf   ;;  %v337_v17 = vlaneseq  ;;  %p227_p9 = scmp.lt.s32.totalorder %s710_s12, 1 }
  0x51   : > { %v529_v4 = vpack.c.bf16 %v241_v3, %v240_v2  ;;  %v243_v6 = vmul.f32 %v241_v3, %v241_v3  ;;  %v255_v9 = vld [vmem:[%s189_s3] sm:$0xff]  ;;  %239 = vst.msk [vmem:[#allocation2] sm:$0xff] %vm238_vm3, %v727_v12  ;;  %vm348_vm4 = vcmask 130112   ;;  %vm365_vm5 = vcmask 130048  }
  0x52   : > { %v245_v7 = vsel %vm244_vm1, %v242_v5, 0.0  ;;  %v376_v10 = vmul.f32 %v255_v9, %v255_v9  ;;  %v338_v18 = vand.u32 127, %v337_v17  ;;  %v340_v19 = vshrl.u32 %v337_v17, 7  ;;  %s939_s12 = smov (!%p227_p9, %s710_s12), 1 }
  0x53   : > { %531 = vmatpush3.bf16.xpose.msk.msra.mxu0 %vm530_vm2, %v529_v4  ;;  %246 = vadd.xlane.f32.xlu0 %v245_v7  ;;  %v248_v8 = vsel %vm244_vm1, %v243_v6, 0.0  ;;  %s511_s20 = sshll.u32 %s939_s12, 3 }
  0x54   : > { %v377_v11 = vsel %vm244_vm1, %v376_v10, 0.0  ;;  %v343_v20 = vadd.s32 4294967288, %v338_v18  ;;  %v341_v22 = vsub.s32 %v338_v18, %v340_v19  ;;  %s233_s4 = scalar_lea.vmem %s922_s2, %s511_s20 }
  0x55   : > { %378 = vadd.xlane.f32.xlu1 %v377_v11 }
  0x56   : > { %v346_v23 = vsub.s32 %v343_v20, %v340_v19 }
  0x57   : > { %249 = vadd.xlane.f32.xlu0 %v248_v8 }
  0x58   : > { %v364_v34 = vld [vmem:[#allocation2] sm:$0xff] }
  0x5a   : > { %526 = vmatmul.mubr.msk.f32.vlgmr.msra.gmra.mrb[0].mxu0 %vm244_vm1, %v255_v9 }
  0xe0   : > { %v247_v13 = vpop.xlane.xlu0 %246 }
  0xe1   : > { %v251_v15 = vmax.f32 %v247_v13, 1e-24 }
  0xe2   : > { %v379_v32 = vpop.xlane.xlu1 %378 }
  0xe3   : > { %598 = vrsqrt.f32 %v251_v15  ;;  %v380_v33 = vmax.f32 %v379_v32, 1e-24 }
  0xe4   : > { %v250_v14 = vpop.xlane.xlu0 %249 }
  0xe5   : > { %v252_v16 = vmax.f32 %v250_v14, 1e-24 }
  0xe7   : > { %600 = vrsqrt.f32 %v252_v16 }
  0xe8   : > { %602 = vrsqrt.f32 %v380_v33 }
  0xed   : > { %v599_v21 = vpop.eup %598 }
  0xee   : > { %v342_v25 = vrot.slane %v599_v21, %v341_v22 }
  0xf1   : > { %v601_v24 = vpop.eup %600 }
  0xf2   : > { %v347_v26 = vrot.slane %v601_v24, %v346_v23  ;;  %v603_v37 = vpop.eup %602 }
  0xf4   : > { %v349_v28 = vsel %vm348_vm4, %v347_v26, %v342_v25 }
 0x12d   : > { %v331_v27 = vpop.f32.mrb[0].mxu0 }
 0x12e   : > { %v363_v29 = vmul.f32 %v349_v28, %v331_v27  ;;  %v527_v30 = vpop.f32.mrb[1].mxu0 }
 0x130   : > { %v366_v31 = vsel %vm365_vm5, %v363_v29, -inf }
 0x131   : > { %367 = vmax.xlane.f32.xlu1 %v366_v31 }
 0x1be   : > { %v368_v35 = vpop.xlane.xlu1 %367 }
 0x1bf   : > { %v369_v36 = vmax.f32 %v364_v34, %v368_v35 }
 0x1c1   : > { %371 = vst.msk [vmem:[#allocation2] sm:$0xff] %vm238_vm3, %v369_v36 }
 0x1c8   : > { %v382_v38 = vld [vmem:[#allocation2] sm:$0xff] }
 0x1c9   : > { %v383_v39 = vmul.f32 %v603_v37, %v382_v38 }
 0x1cb   : > { %v384_v40 = vsub.f32 1.0, %v383_v39 }
 0x1cd   : > { %385 = vst.msk [vmem:[%s233_s4] sm:$0xff] %vm238_vm3, %v384_v40 }
 0x1ce PF: > { %s18_s14 = sadd.s32 1, %s718_s14   ;;  %s931_s9 = smov %s702_s10 }
 0x1cf   : > { %p15_p13 = scmp.ge.s32.totalorder %s18_s14, 4   ;;  %s932_s10 = smov %s706_s11 }
 0x1d0   : > { %s933_s11 = smov %s792_s21  ;;  %s934_s12 = smov %s714_s13 }
 0x1d1   : > { %s935_s13 = smov %s937_s16  ;;  %17 = sbr.rel (!%p15_p13) target bundleno = 6 (0x6), region = 89 }
 0x1d8   :  { %411 = vsyncpa [#allocation4], 1 }
 0x1d9   :  { %413 = vsyncpa [#allocation4 + $0x1], 1 }
 0x1da   :  { %414 = vsyncpa [#allocation6], 1 }
 0x1db   :  { %416 = vsyncpa [#allocation6 + $0x1], 1 }

</bundles_post_ra>
